<compile_context>
chip_gen: v5e
topology: v5e:2x2
jax: 0.10.0
libtpu: 0.0.40
codegen_flags: <defaults>
</compile_context>

<pallas_src>
import functools

import jax
import jax.numpy as jnp
import numpy as np
from jax.experimental import pallas as pl
from jax.experimental.pallas import tpu as pltpu


def _rnn_kernel(idx_ref,      # VMEM (T*B, 1) int32, time-major token ids
                eproj_ref,    # VMEM (V, 4H)  = embed @ W_ih^T, g-cols pre-scaled x2
                whh_ref,      # VMEM (4H, 4H) = W_hh^T zero-padded, g-cols pre-scaled x2
                bl_ref,       # VMEM (1, 4H)  = b_ih + b_hh, g-lanes pre-scaled x2
                w1_ref,       # VMEM (4H, 32) = W1.weight^T zero-padded
                b1_ref,       # VMEM (1, 32)
                w2_ref,       # VMEM (32, 5)  = W2.weight^T
                b2_ref,       # VMEM (1, 5)
                out_ref,      # VMEM (1, 5)   log-softmax output
                *, B, T, H, V):
    G = 4 * H
    TB = T * B

    # ---- Prologue (off the serial path) ------------------------------------
    # Embedding gather + input projection for ALL timesteps in one one-hot
    # matmul against the folded (V, 4H) table.  Bad token ids give a zero row.
    ids = idx_ref[...]                                            # (TB, 1) i32
    lane_v = jax.lax.broadcasted_iota(jnp.int32, (TB, V), 1)      # (TB, V)
    onehot = (ids == lane_v).astype(jnp.float32)                  # (TB, V)
    xproj = (jnp.dot(onehot, eproj_ref[...],
                     preferred_element_type=jnp.float32)
             + bl_ref[...])                                       # (TB, G)

    # Per-step (B, G) operands, sliced once here; the sublane extraction is
    # loop-invariant so the scheduler keeps it off the serial chain.
    x_steps = [xproj[t * B:(t + 1) * B, :] for t in range(T)]

    whh = whh_ref[...]                                            # (G, G) hoisted

    # ---- Recurrence (fully unrolled; T is small & static) -------------------
    # h/c carried full-width (B, 4H).  Only lanes [0, H) are "real"; the
    # zero-padded rows of whh / w1 make the junk lanes contribute exactly 0.
    h = jnp.zeros((B, G), jnp.float32)
    c = jnp.zeros((B, G), jnp.float32)
    for t in range(T):
        gates = x_steps[t] + jnp.dot(h, whh,
                                     preferred_element_type=jnp.float32)
        # Single EUP transcendental per step: g-gate pre-activations were
        # pre-scaled by 2, so tanh(x_g) == 2*sigmoid(2*x_g) - 1.
        s = jax.nn.sigmoid(gates)                 # (B, G) = [i | f | sig(2g) | o]
        # Lane rotations (XLU) align the f / g / o blocks with lanes [0, H).
        f_al = pltpu.roll(s, shift=3 * H, axis=1)            # lanes [0,H) = f
        o_al = pltpu.roll(s, shift=H, axis=1)                # lanes [0,H) = o
        g_al = 2.0 * pltpu.roll(s, shift=2 * H, axis=1) - 1.0  # lanes [0,H) = tanh(g)
        c = f_al * c + s * g_al                   # lanes [0,H): f*c + i*tanh(g)
        h = o_al * jnp.tanh(c)                    # lanes [0,H): o*tanh(c)

    # ---- Head: ReLU(W1) -> W2 -> sum over batch -> log_softmax --------------
    z1 = jnp.maximum(
        jnp.dot(h, w1_ref[...], preferred_element_type=jnp.float32)
        + b1_ref[...], 0.0)                                       # (B, 32)
    z2 = (jnp.dot(z1, w2_ref[...], preferred_element_type=jnp.float32)
          + b2_ref[...])                                          # (B, 5)
    sm = jnp.sum(z2, axis=0, keepdims=True)                       # (1, 5)
    m = jnp.max(sm, axis=1, keepdims=True)
    e = jnp.exp(sm - m)
    out_ref[...] = sm - m - jnp.log(jnp.sum(e, axis=1, keepdims=True))


def prepare_params(embed, w_ih, w_hh, b_ih, b_hh, w1, b1, w2, b2):
    """Fold / transpose / pad PyTorch-layout parameters into kernel form.

    Constant folding only (like the merged LSTM bias): done once per set of
    parameters, entirely off the kernel's critical path.
    """
    H4, _ = w_ih.shape
    H = H4 // 4
    # x2 on the g-gate columns -> single-sigmoid tanh trick inside the kernel.
    gate_scale = jnp.ones((H4,), jnp.float32).at[2 * H:3 * H].set(2.0)

    eproj = jnp.dot(embed, w_ih.T) * gate_scale[None, :]               # (V, 4H)
    whh_pad = (jnp.zeros((H4, H4), jnp.float32).at[:H, :].set(w_hh.T)
               * gate_scale[None, :])                                   # (4H, 4H)
    b_lstm = ((b_ih + b_hh) * gate_scale).reshape(1, H4)                # (1, 4H)
    w1_pad = jnp.zeros((H4, w1.shape[0]), jnp.float32).at[:H, :].set(w1.T)
    return (eproj, whh_pad, b_lstm, w1_pad,
            b1.reshape(1, -1), jnp.asarray(w2.T), b2.reshape(1, -1))


def rnn_forward(indices, eproj, whh_pad, b_lstm, w1_pad, b1, w2_T, b2):
    B, T = indices.shape
    V = eproj.shape[0]
    G = whh_pad.shape[0]
    H = G // 4
    n_cls = w2_T.shape[1]

    # Time-major flat token ids: row t*B + b holds indices[b, t].
    idx_tb = jnp.transpose(indices).reshape(T * B, 1).astype(jnp.int32)

    kernel = functools.partial(_rnn_kernel, B=B, T=T, H=H, V=V)
    vmem = pl.BlockSpec(memory_space=pltpu.MemorySpace.VMEM)  # whole array in VMEM

    return pl.pallas_call(
        kernel,
        out_shape=jax.ShapeDtypeStruct((1, n_cls), jnp.float32),
        in_specs=[vmem] * 8,
        out_specs=vmem,
    )(idx_tb, eproj, whh_pad, b_lstm, w1_pad, b1, w2_T, b2)


def rnn_reference(indices, embed, wih_T, whh_T, b_lstm, w1_T, b1, w2_T, b2):
    """Pure-JAX reference mirroring the PyTorch forward (unfolded params)."""
    x = embed[indices]                                   # (B, T, D)
    B = x.shape[0]
    H = whh_T.shape[0]
    h0 = jnp.zeros((B, H), jnp.float32)
    c0 = jnp.zeros((B, H), jnp.float32)

    def step(carry, x_t):
        h, c = carry
        gates = x_t @ wih_T + h @ whh_T + b_lstm
        i = jax.nn.sigmoid(gates[:, :H])
        f = jax.nn.sigmoid(gates[:, H:2 * H])
        g = jnp.tanh(gates[:, 2 * H:3 * H])
        o = jax.nn.sigmoid(gates[:, 3 * H:])
        c = f * c + i * g
        h = o * jnp.tanh(c)
        return (h, c), None

    (h, _), _ = jax.lax.scan(step, (h0, c0), jnp.swapaxes(x, 0, 1))
    z1 = jnp.maximum(h @ w1_T + b1, 0.0)
    z2 = z1 @ w2_T + b2
    s = jnp.sum(z2, axis=0, keepdims=True)
    return jax.nn.log_softmax(s, axis=1)


if __name__ == "__main__":
    # Small shapes consistent with the module:
    #   vocab V=20, input_dim D=16, hidden H=32 (so 4H = 128 lanes), B=2, T=8.
    V, D, H, B, T = 20, 16, 32, 2, 8

    key = jax.random.PRNGKey(0)
    ks = jax.random.split(key, 8)

    # Frozen pretrained embedding matrix (synthetic, deterministic).
    embed = jax.random.normal(ks[0], (V, D), jnp.float32)

    # LSTM parameters (PyTorch layout: weight_ih (4H, D), weight_hh (4H, H)).
    bound = 1.0 / np.sqrt(H)
    w_ih = jax.random.uniform(ks[1], (4 * H, D), jnp.float32, -bound, bound)
    w_hh = jax.random.uniform(ks[2], (4 * H, H), jnp.float32, -bound, bound)
    b_ih = jax.random.uniform(ks[3], (4 * H,), jnp.float32, -bound, bound)
    b_hh = jax.random.uniform(ks[4], (4 * H,), jnp.float32, -bound, bound)

    # Head parameters: W1 (32, H), W2 (5, 32).
    w1 = jax.random.uniform(ks[5], (32, H), jnp.float32, -bound, bound)
    b1 = jnp.zeros((32,), jnp.float32)
    w2 = jax.random.uniform(ks[6], (5, 32), jnp.float32,
                            -1.0 / np.sqrt(32), 1.0 / np.sqrt(32))
    b2 = jnp.zeros((5,), jnp.float32)

    # Token-id inputs (B, T).
    indices = jax.random.randint(ks[7], (B, T), 0, V, jnp.int32)

    # Kernel-format (folded / padded / pre-scaled) parameters.
    params = prepare_params(embed, w_ih, w_hh, b_ih, b_hh, w1, b1, w2, b2)

    out = rnn_forward(indices, *params)
    out = jax.block_until_ready(out)

    ref = rnn_reference(indices, embed, jnp.asarray(w_ih.T), jnp.asarray(w_hh.T),
                        (b_ih + b_hh).reshape(1, 4 * H), jnp.asarray(w1.T),
                        b1.reshape(1, 32), jnp.asarray(w2.T), b2.reshape(1, 5))
    np.testing.assert_allclose(np.asarray(out), np.asarray(ref),
                               rtol=1e-3, atol=1e-4)

    # TODO(synk): compute_Loss (NLLLoss) is training-only glue, not part of
    # the forward pass; intentionally not implemented in the kernel.
    print("KERNEL_OK")
</pallas_src>

<mosaic_0001>
module attributes {stable_mosaic.version = 11 : i64} {
  func.func @_rnn_kernel(%arg0: memref<16x1xi32, #tpu.memory_space<vmem>>, %arg1: memref<20x128xf32, #tpu.memory_space<vmem>>, %arg2: memref<128x128xf32, #tpu.memory_space<vmem>>, %arg3: memref<1x128xf32, #tpu.memory_space<vmem>>, %arg4: memref<128x32xf32, #tpu.memory_space<vmem>>, %arg5: memref<1x32xf32, #tpu.memory_space<vmem>>, %arg6: memref<32x5xf32, #tpu.memory_space<vmem>>, %arg7: memref<1x5xf32, #tpu.memory_space<vmem>>, %arg8: memref<1x5xf32, #tpu.memory_space<vmem>>) attributes {dimension_semantics = [], scalar_prefetch = 0 : i64, scratch_operands = 0 : i64, tpu.core_type = #tpu.core_type<tc>} {
    %c0 = arith.constant 0 : index
    %c0_0 = arith.constant 0 : index
    %0 = vector.load %arg0[%c0, %c0_0] : memref<16x1xi32, #tpu.memory_space<vmem>>, vector<16x1xi32>
    %1 = tpu.iota {dimensions = array<i32: 1>} : vector<16x20xi32>
    %2 = vector.broadcast %0 : vector<16x1xi32> to vector<16x20xi32>
    %3 = arith.cmpi eq, %2, %1 : vector<16x20xi32>
    %4 = arith.extui %3 : vector<16x20xi1> to vector<16x20xi32>
    %5 = arith.sitofp %4 : vector<16x20xi32> to vector<16x20xf32>
    %c0_1 = arith.constant 0 : index
    %c0_2 = arith.constant 0 : index
    %6 = vector.load %arg1[%c0_1, %c0_2] : memref<20x128xf32, #tpu.memory_space<vmem>>, vector<20x128xf32>
    %cst = arith.constant dense<0.000000e+00> : vector<16x128xf32>
    %7 = tpu.matmul %5, %6, %cst {dimension_numbers = #tpu.dot_dimension_numbers<[1], [0], [0], [1], [0, 0, 1, 1], [], []>} : vector<16x20xf32>, vector<20x128xf32>, vector<16x128xf32> -> vector<16x128xf32>
    %c0_3 = arith.constant 0 : index
    %c0_4 = arith.constant 0 : index
    %8 = vector.load %arg3[%c0_3, %c0_4] : memref<1x128xf32, #tpu.memory_space<vmem>>, vector<1x128xf32>
    %9 = vector.broadcast %8 : vector<1x128xf32> to vector<16x128xf32>
    %10 = arith.addf %7, %9 : vector<16x128xf32>
    %11 = vector.extract_strided_slice %10 {offsets = [0, 0], sizes = [2, 128], strides = [1, 1]} : vector<16x128xf32> to vector<2x128xf32>
    %12 = vector.extract_strided_slice %10 {offsets = [2, 0], sizes = [2, 128], strides = [1, 1]} : vector<16x128xf32> to vector<2x128xf32>
    %13 = vector.extract_strided_slice %10 {offsets = [4, 0], sizes = [2, 128], strides = [1, 1]} : vector<16x128xf32> to vector<2x128xf32>
    %14 = vector.extract_strided_slice %10 {offsets = [6, 0], sizes = [2, 128], strides = [1, 1]} : vector<16x128xf32> to vector<2x128xf32>
    %15 = vector.extract_strided_slice %10 {offsets = [8, 0], sizes = [2, 128], strides = [1, 1]} : vector<16x128xf32> to vector<2x128xf32>
    %16 = vector.extract_strided_slice %10 {offsets = [10, 0], sizes = [2, 128], strides = [1, 1]} : vector<16x128xf32> to vector<2x128xf32>
    %17 = vector.extract_strided_slice %10 {offsets = [12, 0], sizes = [2, 128], strides = [1, 1]} : vector<16x128xf32> to vector<2x128xf32>
    %18 = vector.extract_strided_slice %10 {offsets = [14, 0], sizes = [2, 128], strides = [1, 1]} : vector<16x128xf32> to vector<2x128xf32>
    %c0_5 = arith.constant 0 : index
    %c0_6 = arith.constant 0 : index
    %19 = vector.load %arg2[%c0_5, %c0_6] : memref<128x128xf32, #tpu.memory_space<vmem>>, vector<128x128xf32>
    %cst_7 = arith.constant 0.000000e+00 : f32
    %20 = vector.broadcast %cst_7 : f32 to vector<2x128xf32>
    %cst_8 = arith.constant 0.000000e+00 : f32
    %21 = vector.broadcast %cst_8 : f32 to vector<2x128xf32>
    %cst_9 = arith.constant dense<0.000000e+00> : vector<2x128xf32>
    %22 = tpu.matmul %20, %19, %cst_9 {dimension_numbers = #tpu.dot_dimension_numbers<[1], [0], [0], [1], [0, 0, 1, 1], [], []>} : vector<2x128xf32>, vector<128x128xf32>, vector<2x128xf32> -> vector<2x128xf32>
    %23 = arith.addf %11, %22 : vector<2x128xf32>
    %24 = arith.negf %23 : vector<2x128xf32>
    %25 = math.exp %24 : vector<2x128xf32>
    %cst_10 = arith.constant 1.000000e+00 : f32
    %26 = vector.broadcast %cst_10 : f32 to vector<2x128xf32>
    %27 = arith.addf %26, %25 : vector<2x128xf32>
    %28 = arith.divf %26, %27 : vector<2x128xf32>
    %c96_i32 = arith.constant 96 : i32
    %29 = tpu.dynamic_rotate %28 by %c96_i32 dim 1 : vector<2x128xf32>, i32 -> vector<2x128xf32>
    %c32_i32 = arith.constant 32 : i32
    %30 = tpu.dynamic_rotate %28 by %c32_i32 dim 1 : vector<2x128xf32>, i32 -> vector<2x128xf32>
    %c64_i32 = arith.constant 64 : i32
    %31 = tpu.dynamic_rotate %28 by %c64_i32 dim 1 : vector<2x128xf32>, i32 -> vector<2x128xf32>
    %cst_11 = arith.constant 2.000000e+00 : f32
    %32 = vector.broadcast %cst_11 : f32 to vector<2x128xf32>
    %33 = arith.mulf %32, %31 : vector<2x128xf32>
    %cst_12 = arith.constant 1.000000e+00 : f32
    %34 = vector.broadcast %cst_12 : f32 to vector<2x128xf32>
    %35 = arith.subf %33, %34 : vector<2x128xf32>
    %36 = arith.mulf %29, %21 : vector<2x128xf32>
    %37 = arith.mulf %28, %35 : vector<2x128xf32>
    %38 = arith.addf %36, %37 : vector<2x128xf32>
    %39 = math.tanh %38 : vector<2x128xf32>
    %40 = arith.mulf %30, %39 : vector<2x128xf32>
    %cst_13 = arith.constant dense<0.000000e+00> : vector<2x128xf32>
    %41 = tpu.matmul %40, %19, %cst_13 {dimension_numbers = #tpu.dot_dimension_numbers<[1], [0], [0], [1], [0, 0, 1, 1], [], []>} : vector<2x128xf32>, vector<128x128xf32>, vector<2x128xf32> -> vector<2x128xf32>
    %42 = arith.addf %12, %41 : vector<2x128xf32>
    %43 = arith.negf %42 : vector<2x128xf32>
    %44 = math.exp %43 : vector<2x128xf32>
    %cst_14 = arith.constant 1.000000e+00 : f32
    %45 = vector.broadcast %cst_14 : f32 to vector<2x128xf32>
    %46 = arith.addf %45, %44 : vector<2x128xf32>
    %47 = arith.divf %45, %46 : vector<2x128xf32>
    %c96_i32_15 = arith.constant 96 : i32
    %48 = tpu.dynamic_rotate %47 by %c96_i32_15 dim 1 : vector<2x128xf32>, i32 -> vector<2x128xf32>
    %c32_i32_16 = arith.constant 32 : i32
    %49 = tpu.dynamic_rotate %47 by %c32_i32_16 dim 1 : vector<2x128xf32>, i32 -> vector<2x128xf32>
    %c64_i32_17 = arith.constant 64 : i32
    %50 = tpu.dynamic_rotate %47 by %c64_i32_17 dim 1 : vector<2x128xf32>, i32 -> vector<2x128xf32>
    %cst_18 = arith.constant 2.000000e+00 : f32
    %51 = vector.broadcast %cst_18 : f32 to vector<2x128xf32>
    %52 = arith.mulf %51, %50 : vector<2x128xf32>
    %cst_19 = arith.constant 1.000000e+00 : f32
    %53 = vector.broadcast %cst_19 : f32 to vector<2x128xf32>
    %54 = arith.subf %52, %53 : vector<2x128xf32>
    %55 = arith.mulf %48, %38 : vector<2x128xf32>
    %56 = arith.mulf %47, %54 : vector<2x128xf32>
    %57 = arith.addf %55, %56 : vector<2x128xf32>
    %58 = math.tanh %57 : vector<2x128xf32>
    %59 = arith.mulf %49, %58 : vector<2x128xf32>
    %cst_20 = arith.constant dense<0.000000e+00> : vector<2x128xf32>
    %60 = tpu.matmul %59, %19, %cst_20 {dimension_numbers = #tpu.dot_dimension_numbers<[1], [0], [0], [1], [0, 0, 1, 1], [], []>} : vector<2x128xf32>, vector<128x128xf32>, vector<2x128xf32> -> vector<2x128xf32>
    %61 = arith.addf %13, %60 : vector<2x128xf32>
    %62 = arith.negf %61 : vector<2x128xf32>
    %63 = math.exp %62 : vector<2x128xf32>
    %cst_21 = arith.constant 1.000000e+00 : f32
    %64 = vector.broadcast %cst_21 : f32 to vector<2x128xf32>
    %65 = arith.addf %64, %63 : vector<2x128xf32>
    %66 = arith.divf %64, %65 : vector<2x128xf32>
    %c96_i32_22 = arith.constant 96 : i32
    %67 = tpu.dynamic_rotate %66 by %c96_i32_22 dim 1 : vector<2x128xf32>, i32 -> vector<2x128xf32>
    %c32_i32_23 = arith.constant 32 : i32
    %68 = tpu.dynamic_rotate %66 by %c32_i32_23 dim 1 : vector<2x128xf32>, i32 -> vector<2x128xf32>
    %c64_i32_24 = arith.constant 64 : i32
    %69 = tpu.dynamic_rotate %66 by %c64_i32_24 dim 1 : vector<2x128xf32>, i32 -> vector<2x128xf32>
    %cst_25 = arith.constant 2.000000e+00 : f32
    %70 = vector.broadcast %cst_25 : f32 to vector<2x128xf32>
    %71 = arith.mulf %70, %69 : vector<2x128xf32>
    %cst_26 = arith.constant 1.000000e+00 : f32
    %72 = vector.broadcast %cst_26 : f32 to vector<2x128xf32>
    %73 = arith.subf %71, %72 : vector<2x128xf32>
    %74 = arith.mulf %67, %57 : vector<2x128xf32>
    %75 = arith.mulf %66, %73 : vector<2x128xf32>
    %76 = arith.addf %74, %75 : vector<2x128xf32>
    %77 = math.tanh %76 : vector<2x128xf32>
    %78 = arith.mulf %68, %77 : vector<2x128xf32>
    %cst_27 = arith.constant dense<0.000000e+00> : vector<2x128xf32>
    %79 = tpu.matmul %78, %19, %cst_27 {dimension_numbers = #tpu.dot_dimension_numbers<[1], [0], [0], [1], [0, 0, 1, 1], [], []>} : vector<2x128xf32>, vector<128x128xf32>, vector<2x128xf32> -> vector<2x128xf32>
    %80 = arith.addf %14, %79 : vector<2x128xf32>
    %81 = arith.negf %80 : vector<2x128xf32>
    %82 = math.exp %81 : vector<2x128xf32>
    %cst_28 = arith.constant 1.000000e+00 : f32
    %83 = vector.broadcast %cst_28 : f32 to vector<2x128xf32>
    %84 = arith.addf %83, %82 : vector<2x128xf32>
    %85 = arith.divf %83, %84 : vector<2x128xf32>
    %c96_i32_29 = arith.constant 96 : i32
    %86 = tpu.dynamic_rotate %85 by %c96_i32_29 dim 1 : vector<2x128xf32>, i32 -> vector<2x128xf32>
    %c32_i32_30 = arith.constant 32 : i32
    %87 = tpu.dynamic_rotate %85 by %c32_i32_30 dim 1 : vector<2x128xf32>, i32 -> vector<2x128xf32>
    %c64_i32_31 = arith.constant 64 : i32
    %88 = tpu.dynamic_rotate %85 by %c64_i32_31 dim 1 : vector<2x128xf32>, i32 -> vector<2x128xf32>
    %cst_32 = arith.constant 2.000000e+00 : f32
    %89 = vector.broadcast %cst_32 : f32 to vector<2x128xf32>
    %90 = arith.mulf %89, %88 : vector<2x128xf32>
    %cst_33 = arith.constant 1.000000e+00 : f32
    %91 = vector.broadcast %cst_33 : f32 to vector<2x128xf32>
    %92 = arith.subf %90, %91 : vector<2x128xf32>
    %93 = arith.mulf %86, %76 : vector<2x128xf32>
    %94 = arith.mulf %85, %92 : vector<2x128xf32>
    %95 = arith.addf %93, %94 : vector<2x128xf32>
    %96 = math.tanh %95 : vector<2x128xf32>
    %97 = arith.mulf %87, %96 : vector<2x128xf32>
    %cst_34 = arith.constant dense<0.000000e+00> : vector<2x128xf32>
    %98 = tpu.matmul %97, %19, %cst_34 {dimension_numbers = #tpu.dot_dimension_numbers<[1], [0], [0], [1], [0, 0, 1, 1], [], []>} : vector<2x128xf32>, vector<128x128xf32>, vector<2x128xf32> -> vector<2x128xf32>
    %99 = arith.addf %15, %98 : vector<2x128xf32>
    %100 = arith.negf %99 : vector<2x128xf32>
    %101 = math.exp %100 : vector<2x128xf32>
    %cst_35 = arith.constant 1.000000e+00 : f32
    %102 = vector.broadcast %cst_35 : f32 to vector<2x128xf32>
    %103 = arith.addf %102, %101 : vector<2x128xf32>
    %104 = arith.divf %102, %103 : vector<2x128xf32>
    %c96_i32_36 = arith.constant 96 : i32
    %105 = tpu.dynamic_rotate %104 by %c96_i32_36 dim 1 : vector<2x128xf32>, i32 -> vector<2x128xf32>
    %c32_i32_37 = arith.constant 32 : i32
    %106 = tpu.dynamic_rotate %104 by %c32_i32_37 dim 1 : vector<2x128xf32>, i32 -> vector<2x128xf32>
    %c64_i32_38 = arith.constant 64 : i32
    %107 = tpu.dynamic_rotate %104 by %c64_i32_38 dim 1 : vector<2x128xf32>, i32 -> vector<2x128xf32>
    %cst_39 = arith.constant 2.000000e+00 : f32
    %108 = vector.broadcast %cst_39 : f32 to vector<2x128xf32>
    %109 = arith.mulf %108, %107 : vector<2x128xf32>
    %cst_40 = arith.constant 1.000000e+00 : f32
    %110 = vector.broadcast %cst_40 : f32 to vector<2x128xf32>
    %111 = arith.subf %109, %110 : vector<2x128xf32>
    %112 = arith.mulf %105, %95 : vector<2x128xf32>
    %113 = arith.mulf %104, %111 : vector<2x128xf32>
    %114 = arith.addf %112, %113 : vector<2x128xf32>
    %115 = math.tanh %114 : vector<2x128xf32>
    %116 = arith.mulf %106, %115 : vector<2x128xf32>
    %cst_41 = arith.constant dense<0.000000e+00> : vector<2x128xf32>
    %117 = tpu.matmul %116, %19, %cst_41 {dimension_numbers = #tpu.dot_dimension_numbers<[1], [0], [0], [1], [0, 0, 1, 1], [], []>} : vector<2x128xf32>, vector<128x128xf32>, vector<2x128xf32> -> vector<2x128xf32>
    %118 = arith.addf %16, %117 : vector<2x128xf32>
    %119 = arith.negf %118 : vector<2x128xf32>
    %120 = math.exp %119 : vector<2x128xf32>
    %cst_42 = arith.constant 1.000000e+00 : f32
    %121 = vector.broadcast %cst_42 : f32 to vector<2x128xf32>
    %122 = arith.addf %121, %120 : vector<2x128xf32>
    %123 = arith.divf %121, %122 : vector<2x128xf32>
    %c96_i32_43 = arith.constant 96 : i32
    %124 = tpu.dynamic_rotate %123 by %c96_i32_43 dim 1 : vector<2x128xf32>, i32 -> vector<2x128xf32>
    %c32_i32_44 = arith.constant 32 : i32
    %125 = tpu.dynamic_rotate %123 by %c32_i32_44 dim 1 : vector<2x128xf32>, i32 -> vector<2x128xf32>
    %c64_i32_45 = arith.constant 64 : i32
    %126 = tpu.dynamic_rotate %123 by %c64_i32_45 dim 1 : vector<2x128xf32>, i32 -> vector<2x128xf32>
    %cst_46 = arith.constant 2.000000e+00 : f32
    %127 = vector.broadcast %cst_46 : f32 to vector<2x128xf32>
    %128 = arith.mulf %127, %126 : vector<2x128xf32>
    %cst_47 = arith.constant 1.000000e+00 : f32
    %129 = vector.broadcast %cst_47 : f32 to vector<2x128xf32>
    %130 = arith.subf %128, %129 : vector<2x128xf32>
    %131 = arith.mulf %124, %114 : vector<2x128xf32>
    %132 = arith.mulf %123, %130 : vector<2x128xf32>
    %133 = arith.addf %131, %132 : vector<2x128xf32>
    %134 = math.tanh %133 : vector<2x128xf32>
    %135 = arith.mulf %125, %134 : vector<2x128xf32>
    %cst_48 = arith.constant dense<0.000000e+00> : vector<2x128xf32>
    %136 = tpu.matmul %135, %19, %cst_48 {dimension_numbers = #tpu.dot_dimension_numbers<[1], [0], [0], [1], [0, 0, 1, 1], [], []>} : vector<2x128xf32>, vector<128x128xf32>, vector<2x128xf32> -> vector<2x128xf32>
    %137 = arith.addf %17, %136 : vector<2x128xf32>
    %138 = arith.negf %137 : vector<2x128xf32>
    %139 = math.exp %138 : vector<2x128xf32>
    %cst_49 = arith.constant 1.000000e+00 : f32
    %140 = vector.broadcast %cst_49 : f32 to vector<2x128xf32>
    %141 = arith.addf %140, %139 : vector<2x128xf32>
    %142 = arith.divf %140, %141 : vector<2x128xf32>
    %c96_i32_50 = arith.constant 96 : i32
    %143 = tpu.dynamic_rotate %142 by %c96_i32_50 dim 1 : vector<2x128xf32>, i32 -> vector<2x128xf32>
    %c32_i32_51 = arith.constant 32 : i32
    %144 = tpu.dynamic_rotate %142 by %c32_i32_51 dim 1 : vector<2x128xf32>, i32 -> vector<2x128xf32>
    %c64_i32_52 = arith.constant 64 : i32
    %145 = tpu.dynamic_rotate %142 by %c64_i32_52 dim 1 : vector<2x128xf32>, i32 -> vector<2x128xf32>
    %cst_53 = arith.constant 2.000000e+00 : f32
    %146 = vector.broadcast %cst_53 : f32 to vector<2x128xf32>
    %147 = arith.mulf %146, %145 : vector<2x128xf32>
    %cst_54 = arith.constant 1.000000e+00 : f32
    %148 = vector.broadcast %cst_54 : f32 to vector<2x128xf32>
    %149 = arith.subf %147, %148 : vector<2x128xf32>
    %150 = arith.mulf %143, %133 : vector<2x128xf32>
    %151 = arith.mulf %142, %149 : vector<2x128xf32>
    %152 = arith.addf %150, %151 : vector<2x128xf32>
    %153 = math.tanh %152 : vector<2x128xf32>
    %154 = arith.mulf %144, %153 : vector<2x128xf32>
    %cst_55 = arith.constant dense<0.000000e+00> : vector<2x128xf32>
    %155 = tpu.matmul %154, %19, %cst_55 {dimension_numbers = #tpu.dot_dimension_numbers<[1], [0], [0], [1], [0, 0, 1, 1], [], []>} : vector<2x128xf32>, vector<128x128xf32>, vector<2x128xf32> -> vector<2x128xf32>
    %156 = arith.addf %18, %155 : vector<2x128xf32>
    %157 = arith.negf %156 : vector<2x128xf32>
    %158 = math.exp %157 : vector<2x128xf32>
    %cst_56 = arith.constant 1.000000e+00 : f32
    %159 = vector.broadcast %cst_56 : f32 to vector<2x128xf32>
    %160 = arith.addf %159, %158 : vector<2x128xf32>
    %161 = arith.divf %159, %160 : vector<2x128xf32>
    %c96_i32_57 = arith.constant 96 : i32
    %162 = tpu.dynamic_rotate %161 by %c96_i32_57 dim 1 : vector<2x128xf32>, i32 -> vector<2x128xf32>
    %c32_i32_58 = arith.constant 32 : i32
    %163 = tpu.dynamic_rotate %161 by %c32_i32_58 dim 1 : vector<2x128xf32>, i32 -> vector<2x128xf32>
    %c64_i32_59 = arith.constant 64 : i32
    %164 = tpu.dynamic_rotate %161 by %c64_i32_59 dim 1 : vector<2x128xf32>, i32 -> vector<2x128xf32>
    %cst_60 = arith.constant 2.000000e+00 : f32
    %165 = vector.broadcast %cst_60 : f32 to vector<2x128xf32>
    %166 = arith.mulf %165, %164 : vector<2x128xf32>
    %cst_61 = arith.constant 1.000000e+00 : f32
    %167 = vector.broadcast %cst_61 : f32 to vector<2x128xf32>
    %168 = arith.subf %166, %167 : vector<2x128xf32>
    %169 = arith.mulf %162, %152 : vector<2x128xf32>
    %170 = arith.mulf %161, %168 : vector<2x128xf32>
    %171 = arith.addf %169, %170 : vector<2x128xf32>
    %172 = math.tanh %171 : vector<2x128xf32>
    %173 = arith.mulf %163, %172 : vector<2x128xf32>
    %c0_62 = arith.constant 0 : index
    %c0_63 = arith.constant 0 : index
    %174 = vector.load %arg4[%c0_62, %c0_63] : memref<128x32xf32, #tpu.memory_space<vmem>>, vector<128x32xf32>
    %cst_64 = arith.constant dense<0.000000e+00> : vector<2x32xf32>
    %175 = tpu.matmul %173, %174, %cst_64 {dimension_numbers = #tpu.dot_dimension_numbers<[1], [0], [0], [1], [0, 0, 1, 1], [], []>} : vector<2x128xf32>, vector<128x32xf32>, vector<2x32xf32> -> vector<2x32xf32>
    %c0_65 = arith.constant 0 : index
    %c0_66 = arith.constant 0 : index
    %176 = vector.load %arg5[%c0_65, %c0_66] : memref<1x32xf32, #tpu.memory_space<vmem>>, vector<1x32xf32>
    %177 = vector.broadcast %176 : vector<1x32xf32> to vector<2x32xf32>
    %178 = arith.addf %175, %177 : vector<2x32xf32>
    %cst_67 = arith.constant 0.000000e+00 : f32
    %179 = vector.broadcast %cst_67 : f32 to vector<2x32xf32>
    %180 = arith.maximumf %178, %179 : vector<2x32xf32>
    %c0_68 = arith.constant 0 : index
    %c0_69 = arith.constant 0 : index
    %181 = vector.load %arg6[%c0_68, %c0_69] : memref<32x5xf32, #tpu.memory_space<vmem>>, vector<32x5xf32>
    %cst_70 = arith.constant dense<0.000000e+00> : vector<2x5xf32>
    %182 = tpu.matmul %180, %181, %cst_70 {dimension_numbers = #tpu.dot_dimension_numbers<[1], [0], [0], [1], [0, 0, 1, 1], [], []>} : vector<2x32xf32>, vector<32x5xf32>, vector<2x5xf32> -> vector<2x5xf32>
    %c0_71 = arith.constant 0 : index
    %c0_72 = arith.constant 0 : index
    %183 = vector.load %arg7[%c0_71, %c0_72] : memref<1x5xf32, #tpu.memory_space<vmem>>, vector<1x5xf32>
    %184 = vector.broadcast %183 : vector<1x5xf32> to vector<2x5xf32>
    %185 = arith.addf %182, %184 : vector<2x5xf32>
    %cst_73 = arith.constant dense<0.000000e+00> : vector<5xf32>
    %186 = vector.multi_reduction <add>, %185, %cst_73 [0] : vector<2x5xf32> to vector<5xf32>
    %187 = vector.shape_cast %186 : vector<5xf32> to vector<1x5xf32>
    %cst_74 = arith.constant dense<0xFF800000> : vector<1xf32>
    %188 = vector.multi_reduction <maximumf>, %187, %cst_74 [1] : vector<1x5xf32> to vector<1xf32>
    %189 = vector.shape_cast %188 : vector<1xf32> to vector<1x1xf32>
    %190 = vector.broadcast %189 : vector<1x1xf32> to vector<1x5xf32>
    %191 = arith.subf %187, %190 : vector<1x5xf32>
    %192 = math.exp %191 : vector<1x5xf32>
    %193 = vector.broadcast %189 : vector<1x1xf32> to vector<1x5xf32>
    %194 = arith.subf %187, %193 : vector<1x5xf32>
    %cst_75 = arith.constant dense<0.000000e+00> : vector<1xf32>
    %195 = vector.multi_reduction <add>, %192, %cst_75 [1] : vector<1x5xf32> to vector<1xf32>
    %196 = vector.shape_cast %195 : vector<1xf32> to vector<1x1xf32>
    %197 = math.log %196 : vector<1x1xf32>
    %198 = vector.broadcast %197 : vector<1x1xf32> to vector<1x5xf32>
    %199 = arith.subf %194, %198 : vector<1x5xf32>
    %c0_76 = arith.constant 0 : index
    %c0_77 = arith.constant 0 : index
    %200 = vector.load %arg8[%c0_76, %c0_77] : memref<1x5xf32, #tpu.memory_space<vmem>>, vector<1x5xf32>
    tpu.vector_store %arg8[%c0_76, %c0_77], %199 {strides = array<i32>} : memref<1x5xf32, #tpu.memory_space<vmem>>, vector<1x5xf32>,
    return
  }
}

</mosaic_0001>

<bundles_post_ra>
// kernel: tpu_custom_call.1
= control target key start
LH: loop header
LB: loop body
LE: loop exit
PB: predicated region body
PF: predicated region fallthrough
CT: control target
= control target key end

     0   :  { %v821_v3 = vmov 0   ;;  %vm60_vm0 = vcmask 1043456   ;;  %s1220_s0 = inlined_call_operand.vmem [shape: s32[16,1], index: 0, kind: input, shape index: {}]   ;;  %s1221_s1 = inlined_call_operand.vmem [shape: f32[20,128], index: 1, kind: input, shape index: {}]   ;;  %s1222_s2 = inlined_call_operand.vmem [shape: f32[128,128], index: 2, kind: input, shape index: {}]   ;;  %s1223_s3 = inlined_call_operand.vmem [shape: f32[1,128], index: 3, kind: input, shape index: {}]   ;;  %s1224_s4 = inlined_call_operand.vmem [shape: f32[128,32], index: 4, kind: input, shape index: {}]   ;;  %s1225_s5 = inlined_call_operand.vmem [shape: f32[1,32], index: 5, kind: input, shape index: {}]   ;;  %s1226_s6 = inlined_call_operand.vmem [shape: f32[32,5], index: 6, kind: input, shape index: {}]   ;;  %s1227_s7 = inlined_call_operand.vmem [shape: f32[1,5], index: 7, kind: input, shape index: {}]   ;;  %s1228_s8 = inlined_call_operand.hbm [shape: f32[1,5], index: 8, kind: output, shape index: {}]  }
   0x1   :  { %v30_v0 = vld [vmem:[%s1220_s0] sm:$0xff]  ;;  %v878_v1 = vld [vmem:[%s1222_s2 + $0x78] sm:$0xff]  ;;  %v883_v2 = vld [vmem:[%s1222_s2 + $0x70] sm:$0xff]  ;;  %739 = vset.pattern.permute.xlu0 %v821_v3 }
   0x2   :  { %103 = vmatpush.msra.mxu1 %v878_v1  ;;  %35 = vperm.xlu0 %739, %v30_v0   ;;  %v889_v4 = vld [vmem:[%s1222_s2 + $0x68] sm:$0xff]  ;;  %v897_v5 = vld [vmem:[%s1222_s2 + $0x60] sm:$0xff]  ;;  %v48_v6 = vld [vmem:[%s1221_s1 + $0x10] sm:$0xf] }
   0x3   :  { %156 = vmatpush.msra.mxu2 %v878_v1  ;;  %221 = vmatpush.msra.mxu3 %v878_v1  ;;  %v907_v7 = vld [vmem:[%s1222_s2 + $0x58] sm:$0xff]  ;;  %v47_v8 = vld [vmem:[%s1221_s1 + $0x8] sm:$0xff] }
   0x4   :  { %104 = vmatpush.msra.mxu1 %v883_v2  ;;  %713 = vmatpush.msk.msra.mxu0 %vm60_vm0, %v48_v6 }
   0x5   :  { %157 = vmatpush.msra.mxu2 %v883_v2  ;;  %222 = vmatpush.msra.mxu3 %v883_v2 }
   0x6   :  { %105 = vmatpush.msra.mxu1 %v889_v4 }
   0x7   :  { %158 = vmatpush.msra.mxu2 %v889_v4 }
   0x8   :  { %13 = vsyncpa [#allocation3], 0  ;;  %106 = vmatpush.msra.mxu1 %v897_v5  ;;  %78 = vmatpush.msra.mxu0 %v47_v8  ;;  %v918_v9 = vld [vmem:[%s1222_s2 + $0x50] sm:$0xff]  ;;  %v926_v10 = vld [vmem:[%s1222_s2 + $0x48] sm:$0xff]  ;;  %v822_v21 = vmov 0.0   ;;  %v32_v22 = vlaneseq  ;;  %vm53_vm1 = vcmask 162816  }
   0x9   :  { %159 = vmatpush.msra.mxu2 %v897_v5  ;;  %223 = vmatpush.msra.mxu3 %v889_v4  ;;  %v934_v11 = vld [vmem:[%s1222_s2 + $0x40] sm:$0xff]  ;;  %v942_v12 = vld [vmem:[%s1222_s2 + $0x38] sm:$0xff]  ;;  %v950_v13 = vld [vmem:[%s1222_s2 + $0x30] sm:$0xff]  ;;  %s824_s23 = smov 64   ;;  %s825_s24 = smov 32  }
   0xa   :  { %107 = vmatpush.msra.mxu1 %v907_v7  ;;  %v958_v14 = vld [vmem:[%s1222_s2 + $0x28] sm:$0xff]  ;;  %v966_v15 = vld [vmem:[%s1222_s2 + $0x20] sm:$0xff]  ;;  %v974_v16 = vld [vmem:[%s1222_s2 + $0x18] sm:$0xff]  ;;  %v1059_v23 = vand.u32 127, %v32_v22  ;;  %s702_s22 = sshll.u32 %s1228_s8, 4  ;;  %s703_s22 = int_to_ptr.hbm [resolvable:$true] %s702_s22 }
   0xb   :  { %160 = vmatpush.msra.mxu2 %v907_v7  ;;  %224 = vmatpush.msra.mxu3 %v897_v5  ;;  %v982_v17 = vld [vmem:[%s1222_s2 + $0x10] sm:$0xff]  ;;  %v46_v18 = vld [vmem:[%s1221_s1] sm:$0xff]  ;;  %v999_v19 = vld [vmem:[%s1222_s2 + $0x8] sm:$0xff] }
   0xc   :  { %108 = vmatpush.msra.mxu1 %v918_v9  ;;  %79 = vmatpush.msra.mxu0 %v46_v18  ;;  %v1005_v20 = vld [vmem:[%s1222_s2] sm:$0xff] }
   0xd   :  { %161 = vmatpush.msra.mxu2 %v918_v9  ;;  %225 = vmatpush.msra.mxu3 %v907_v7  ;;  %v1101_v26 = vld [vmem:[%s1223_s3] ss:$0 sm:$0xff]  ;;  %s823_s3 = smov 96  }
   0xe   :  { %109 = vmatpush.msra.mxu1 %v926_v10  ;;  %286 = vmatpush.msrb.mxu0 %v878_v1 }
   0xf   :  { %162 = vmatpush.msra.mxu2 %v926_v10  ;;  %226 = vmatpush.msra.mxu3 %v918_v9 }
  0x10   :  { %110 = vmatpush.msra.mxu1 %v934_v11  ;;  %287 = vmatpush.msrb.mxu0 %v883_v2 }
  0x11   :  { %163 = vmatpush.msra.mxu2 %v934_v11  ;;  %227 = vmatpush.msra.mxu3 %v926_v10 }
  0x12   :  { %111 = vmatpush.msra.mxu1 %v942_v12  ;;  %288 = vmatpush.msrb.mxu0 %v889_v4 }
  0x13   :  { %164 = vmatpush.msra.mxu2 %v942_v12  ;;  %228 = vmatpush.msra.mxu3 %v934_v11 }
  0x14   :  { %112 = vmatpush.msra.mxu1 %v950_v13  ;;  %289 = vmatpush.msrb.mxu0 %v897_v5 }
  0x15   :  { %165 = vmatpush.msra.mxu2 %v950_v13  ;;  %229 = vmatpush.msra.mxu3 %v942_v12 }
  0x16   :  { %113 = vmatpush.msra.mxu1 %v958_v14  ;;  %290 = vmatpush.msrb.mxu0 %v907_v7 }
  0x17   :  { %166 = vmatpush.msra.mxu2 %v958_v14  ;;  %230 = vmatpush.msra.mxu3 %v950_v13 }
  0x18   :  { %114 = vmatpush.msra.mxu1 %v966_v15  ;;  %291 = vmatpush.msrb.mxu0 %v918_v9 }
  0x19   :  { %167 = vmatpush.msra.mxu2 %v966_v15  ;;  %231 = vmatpush.msra.mxu3 %v958_v14 }
  0x1a   :  { %115 = vmatpush.msra.mxu1 %v974_v16  ;;  %292 = vmatpush.msrb.mxu0 %v926_v10 }
  0x1b   :  { %168 = vmatpush.msra.mxu2 %v974_v16  ;;  %232 = vmatpush.msra.mxu3 %v966_v15 }
  0x1c   :  { %116 = vmatpush.msra.mxu1 %v982_v17  ;;  %293 = vmatpush.msrb.mxu0 %v934_v11 }
  0x1d   :  { %169 = vmatpush.msra.mxu2 %v982_v17  ;;  %233 = vmatpush.msra.mxu3 %v974_v16 }
  0x1e   :  { %117 = vmatpush.msra.mxu1 %v999_v19  ;;  %294 = vmatpush.msrb.mxu0 %v942_v12 }
  0x1f   :  { %234 = vmatpush.msra.mxu3 %v982_v17  ;;  %170 = vmatpush.msra.mxu2 %v999_v19 }
  0x20   :  { %118 = vmatpush.msra.mxu1 %v1005_v20  ;;  %295 = vmatpush.msrb.mxu0 %v950_v13 }
  0x21   :  { %235 = vmatpush.msra.mxu3 %v999_v19  ;;  %119 = vmatmul.f32.vlgmr.msra.gmra.mxu1 %v822_v21 }
  0x22   :  { %171 = vmatpush.msra.mxu2 %v1005_v20  ;;  %351 = vmatpush.msrb.mxu1 %v878_v1 }
  0x23   :  { %236 = vmatpush.msra.mxu3 %v1005_v20  ;;  %296 = vmatpush.msrb.mxu0 %v958_v14 }
  0x24   :  { %404 = vmatpush.msrb.mxu2 %v878_v1  ;;  %352 = vmatpush.msrb.mxu1 %v883_v2 }
  0x25   :  { %469 = vmatpush.msrb.mxu3 %v878_v1  ;;  %297 = vmatpush.msrb.mxu0 %v966_v15 }
  0x26   :  { %405 = vmatpush.msrb.mxu2 %v883_v2  ;;  %353 = vmatpush.msrb.mxu1 %v889_v4 }
  0x27   :  { %470 = vmatpush.msrb.mxu3 %v883_v2  ;;  %298 = vmatpush.msrb.mxu0 %v974_v16 }
  0x28   :  { %406 = vmatpush.msrb.mxu2 %v889_v4  ;;  %354 = vmatpush.msrb.mxu1 %v897_v5 }
  0x29   :  { %471 = vmatpush.msrb.mxu3 %v889_v4  ;;  %299 = vmatpush.msrb.mxu0 %v982_v17 }
  0x2a   :  { %407 = vmatpush.msrb.mxu2 %v897_v5  ;;  %355 = vmatpush.msrb.mxu1 %v907_v7 }
  0x2b   :  { %472 = vmatpush.msrb.mxu3 %v897_v5  ;;  %300 = vmatpush.msrb.mxu0 %v999_v19 }
  0x2c   :  { %408 = vmatpush.msrb.mxu2 %v907_v7  ;;  %356 = vmatpush.msrb.mxu1 %v918_v9 }
  0x2d   :  { %473 = vmatpush.msrb.mxu3 %v907_v7  ;;  %301 = vmatpush.msrb.mxu0 %v1005_v20 }
  0x2e   :  { %409 = vmatpush.msrb.mxu2 %v918_v9  ;;  %357 = vmatpush.msrb.mxu1 %v926_v10 }
  0x2f   :  { %474 = vmatpush.msrb.mxu3 %v918_v9 }
  0x30   :  { %410 = vmatpush.msrb.mxu2 %v926_v10  ;;  %358 = vmatpush.msrb.mxu1 %v934_v11 }
  0x31   :  { %475 = vmatpush.msrb.mxu3 %v926_v10 }
  0x32   :  { %411 = vmatpush.msrb.mxu2 %v934_v11  ;;  %359 = vmatpush.msrb.mxu1 %v942_v12 }
  0x33   :  { %476 = vmatpush.msrb.mxu3 %v934_v11 }
  0x34   :  { %412 = vmatpush.msrb.mxu2 %v942_v12  ;;  %360 = vmatpush.msrb.mxu1 %v950_v13 }
  0x35   :  { %477 = vmatpush.msrb.mxu3 %v942_v12 }
  0x36   :  { %413 = vmatpush.msrb.mxu2 %v950_v13  ;;  %361 = vmatpush.msrb.mxu1 %v958_v14 }
  0x37   :  { %478 = vmatpush.msrb.mxu3 %v950_v13 }
  0x38   :  { %414 = vmatpush.msrb.mxu2 %v958_v14  ;;  %362 = vmatpush.msrb.mxu1 %v966_v15 }
  0x39   :  { %479 = vmatpush.msrb.mxu3 %v958_v14 }
  0x3a   :  { %415 = vmatpush.msrb.mxu2 %v966_v15  ;;  %363 = vmatpush.msrb.mxu1 %v974_v16 }
  0x3b   :  { %480 = vmatpush.msrb.mxu3 %v966_v15 }
  0x3c   :  { %416 = vmatpush.msrb.mxu2 %v974_v16  ;;  %364 = vmatpush.msrb.mxu1 %v982_v17 }
  0x3d   :  { %481 = vmatpush.msrb.mxu3 %v974_v16 }
  0x3e   :  { %417 = vmatpush.msrb.mxu2 %v982_v17  ;;  %365 = vmatpush.msrb.mxu1 %v999_v19 }
  0x3f   :  { %482 = vmatpush.msrb.mxu3 %v982_v17 }
  0x40   :  { %418 = vmatpush.msrb.mxu2 %v999_v19  ;;  %366 = vmatpush.msrb.mxu1 %v1005_v20 }
  0x41   :  { %483 = vmatpush.msrb.mxu3 %v999_v19 }
  0x42   :  { %419 = vmatpush.msrb.mxu2 %v1005_v20 }
  0x43   :  { %484 = vmatpush.msrb.mxu3 %v1005_v20 }
  0x74   :  { %v36_v24 = vpop.permute.xlu0 %35 }
  0x75   :  { %vm40_vm2 = vcmp.eq.s32.totalorder %v36_v24, %v1059_v23 }
  0x76   :  { %v711_v25 = vsel %vm40_vm2, 1.0, %v822_v21 }
  0x77   :  { %714 = vmatmul.msk.f32.vlgmr.msra.gmra.mxu0 %vm53_vm1, %v711_v25 }
  0x78   :  { %534 = vmatpush.msra.mxu0 %v878_v1 }
  0x7a   :  { %535 = vmatpush.msra.mxu0 %v883_v2 }
  0x7c   :  { %536 = vmatpush.msra.mxu0 %v889_v4 }
  0x7e   :  { %537 = vmatpush.msra.mxu0 %v897_v5 }
  0x80   :  { %538 = vmatpush.msra.mxu0 %v907_v7  ;;  %v31_v7 = vld [vmem:[%s1220_s0 + $0x8] sm:$0xff] }
  0x82   :  { %539 = vmatpush.msra.mxu0 %v918_v9 }
  0x84   :  { %540 = vmatpush.msra.mxu0 %v926_v10 }
  0x86   :  { %541 = vmatpush.msra.mxu0 %v934_v11 }
  0x88   :  { %542 = vmatpush.msra.mxu0 %v942_v12 }
  0x8a   :  { %543 = vmatpush.msra.mxu0 %v950_v13 }
  0x8c   :  { %544 = vmatpush.msra.mxu0 %v958_v14 }
  0x8e   :  { %545 = vmatpush.msra.mxu0 %v966_v15 }
  0x90   :  { %546 = vmatpush.msra.mxu0 %v974_v16 }
  0x92   :  { %547 = vmatpush.msra.mxu0 %v982_v17 }
  0x94   :  { %548 = vmatpush.msra.mxu0 %v999_v19 }
  0x96   :  { %549 = vmatpush.msra.mxu0 %v1005_v20 }
  0x9e   :  { %v120_v28 = vpop.f32.mrf.mxu1 }
  0xf4   :  { %v81_v27 = vpop.f32.mrf.mxu0 }
  0xf5   :  { %v1104_v29 = vadd.f32 %v1101_v26, %v81_v27 }
  0xf7   :  { %v123_v30 = vadd.f32 %v120_v28, %v1104_v29 }
  0xf9   :  { %v716_v31 = vmul.f32 -1.442695, %v123_v30 }
  0xfb   :  { %743 = vpow2.f32 %v716_v31 }
 0x101   :  { %v744_v32 = vpop.eup %743 }
 0x102   :  { %v127_v33 = vadd.f32 1.0, %v744_v32 }
 0x104   :  { %745 = vrcp.f32 %v127_v33  ;;  %v139_v37 = vand.u32 2147483648, %v127_v33  ;;  %v137_v39 = vand.u32 2147483647, %v127_v33  ;;  %vm133_vm4 = vweird.f32 %v127_v33 }
 0x106   :  { %v140_v41 = vor.u32 1.1754944e-38, %v139_v37  ;;  %vm138_vm6 = vcmp.eq.f32.partialorder %v137_v39, 8.507059e+37 }
 0x10a   :  { %v746_v34 = vpop.eup %745 }
 0x10b   :  { %v129_v35 = vmul.f32 %v746_v34, %v127_v33  ;;  %vm134_vm3 = vweird.f32 %v746_v34 }
 0x10c   :  { %vm135_vm5 = vmor %vm133_vm4, %vm134_vm3 }
 0x10d   :  { %v130_v36 = vsub.f32 1.0, %v129_v35 }
 0x10f   :  { %v131_v38 = vmul.f32 %v746_v34, %v130_v36 }
 0x111   :  { %v132_v40 = vadd.f32 %v746_v34, %v131_v38 }
 0x113   :  { %v136_v42 = vsel %vm135_vm5, %v746_v34, %v132_v40 }
 0x114   :  { %v141_v43 = vsel %vm138_vm6, %v140_v41, %v136_v42 }
 0x115   :  { %143 = vrot.lane.b32.xlu1 %v141_v43, %s823_s3  ;;  %147 = vrot.lane.b32.xlu0 %v141_v43, %s824_s23 }
 0x11d   :  { %145 = vrot.lane.b32.xlu1 %v141_v43, %s825_s24 }
 0x187   :  { %v148_v44 = vpop.permute.xlu0 %147  ;;  %v144_v46 = vpop.permute.xlu1 %143 }
 0x188   :  { %v149_v45 = vmul.f32 2.0, %v148_v44  ;;  %v151_v48 = vmul.f32 0.0, %v144_v46 }
 0x18a   :  { %v717_v47 = vadd.f32 -1.0, %v149_v45 }
 0x18c   :  { %v152_v49 = vmul.f32 %v717_v47, %v141_v43 }
 0x18e   :  { %v153_v50 = vadd.f32 %v152_v49, %v151_v48 }
 0x18f   :  { %v146_v52 = vpop.permute.xlu1 %145 }
 0x190   :  { %747 = vtanh.f32 %v153_v50 }
 0x196   :  { %v748_v51 = vpop.eup %747 }
 0x197   :  { %v155_v53 = vmul.f32 %v748_v51, %v146_v52 }
 0x199   :  { %172 = vmatmul.f32.vlgmr.msra.gmra.mxu2 %v155_v53 }
 0x21c   :  { %v173_v54 = vpop.f32.mrf.mxu2 }
 0x21d   :  { %v177_v55 = vrot.slane %v173_v54, 6 }
 0x21f   :  { %v179_v56 = vadd.f32 %v177_v55, %v1104_v29 }
 0x221   :  { %v718_v57 = vmul.f32 -1.442695, %v179_v56 }
 0x223   :  { %749 = vpow2.f32 %v718_v57 }
 0x229   :  { %v750_v58 = vpop.eup %749 }
 0x22a   :  { %v183_v59 = vadd.f32 1.0, %v750_v58 }
 0x22c   :  { %751 = vrcp.f32 %v183_v59  ;;  %v195_v63 = vand.u32 2147483648, %v183_v59  ;;  %v193_v1 = vand.u32 2147483647, %v183_v59  ;;  %vm189_vm8 = vweird.f32 %v183_v59 }
 0x22e   :  { %v196_v3 = vor.u32 1.1754944e-38, %v195_v63  ;;  %vm194_vm10 = vcmp.eq.f32.partialorder %v193_v1, 8.507059e+37 }
 0x232   :  { %v752_v60 = vpop.eup %751 }
 0x233   :  { %v185_v61 = vmul.f32 %v752_v60, %v183_v59  ;;  %vm190_vm7 = vweird.f32 %v752_v60 }
 0x234   :  { %vm191_vm9 = vmor %vm189_vm8, %vm190_vm7 }
 0x235   :  { %v186_v62 = vsub.f32 1.0, %v185_v61 }
 0x237   :  { %v187_v0 = vmul.f32 %v752_v60, %v186_v62 }
 0x239   :  { %v188_v2 = vadd.f32 %v752_v60, %v187_v0 }
 0x23b   :  { %v192_v4 = vsel %vm191_vm9, %v752_v60, %v188_v2 }
 0x23c   :  { %v197_v5 = vsel %vm194_vm10, %v196_v3, %v192_v4 }
 0x23d   :  { %v200_v6 = vrot.slane %v197_v5, 2 }
 0x23f   :  { %204 = vrot.lane.b32.xlu0 %v200_v6, %s825_s24  ;;  %206 = vrot.lane.b32.xlu2 %v200_v6, %s824_s23 }
 0x247   :  { %38 = vperm.xlu0 %739, %v31_v7   ;;  %202 = vrot.lane.b32.xlu2 %v200_v6, %s823_s3 }
 0x299   :  { %v207_v8 = vpop.permute.xlu2 %206 }
 0x29a   :  { %v208_v9 = vmul.f32 2.0, %v207_v8 }
 0x29c   :  { %v719_v10 = vadd.f32 -1.0, %v208_v9 }
 0x29e   :  { %v212_v11 = vrot.slane %v719_v10, 6 }
 0x2a0   :  { %v214_v12 = vmul.f32 %v212_v11, %v197_v5 }
 0x2a1   :  { %v203_v13 = vpop.permute.xlu2 %202 }
 0x2a2   :  { %v216_v14 = vrot.slane %v214_v12, 2  ;;  %v210_v15 = vmul.f32 %v203_v13, %v153_v50 }
 0x2a4   :  { %v218_v16 = vadd.f32 %v216_v14, %v210_v15 }
 0x2a6   :  { %753 = vtanh.f32 %v218_v16 }
 0x2ac   :  { %v754_v17 = vpop.eup %753 }
 0x2b1   :  { %v205_v18 = vpop.permute.xlu0 %204 }
 0x2b2   :  { %v220_v19 = vmul.f32 %v754_v17, %v205_v18 }
 0x2b4   :  { %237 = vmatmul.f32.vlgmr.msra.gmra.mxu3 %v220_v19 }
 0x2b9   :  { %v39_v20 = vpop.permute.xlu0 %38 }
 0x2ba   :  { %vm41_vm11 = vcmp.eq.s32.totalorder %v39_v20, %v1059_v23 }
 0x2bb   :  { %v712_v22 = vsel %vm41_vm11, 1.0, %v822_v21 }
 0x2bc   :  { %715 = vmatmul.msk.f32.gmra.mxu0 %vm53_vm1, %v712_v22 }
 0x337   :  { %v238_v24 = vpop.f32.mrf.mxu3 }
 0x338   :  { %v242_v25 = vrot.slane %v238_v24, 4 }
 0x339   :  { %v84_v53 = vpop.f32.mrf.mxu0 }
 0x33a   :  { %v244_v27 = vadd.f32 %v242_v25, %v1104_v29  ;;  %v1129_v18 = vadd.f32 %v1101_v26, %v84_v53 }
 0x33c   :  { %v720_v28 = vmul.f32 -1.442695, %v244_v27 }
 0x33e   :  { %755 = vpow2.f32 %v720_v28 }
 0x344   :  { %v756_v30 = vpop.eup %755 }
 0x345   :  { %v248_v31 = vadd.f32 1.0, %v756_v30 }
 0x347   :  { %757 = vrcp.f32 %v248_v31  ;;  %v260_v35 = vand.u32 2147483648, %v248_v31  ;;  %v258_v23 = vand.u32 2147483647, %v248_v31  ;;  %vm254_vm13 = vweird.f32 %v248_v31 }
 0x349   :  { %v261_v21 = vor.u32 1.1754944e-38, %v260_v35  ;;  %vm259_vm15 = vcmp.eq.f32.partialorder %v258_v23, 8.507059e+37 }
 0x34d   :  { %v758_v32 = vpop.eup %757 }
 0x34e   :  { %v250_v33 = vmul.f32 %v758_v32, %v248_v31  ;;  %vm255_vm12 = vweird.f32 %v758_v32 }
 0x34f   :  { %vm256_vm14 = vmor %vm254_vm13, %vm255_vm12 }
 0x350   :  { %v251_v34 = vsub.f32 1.0, %v250_v33 }
 0x352   :  { %v252_v36 = vmul.f32 %v758_v32, %v251_v34 }
 0x354   :  { %v253_v37 = vadd.f32 %v758_v32, %v252_v36 }
 0x356   :  { %v257_v38 = vsel %vm256_vm14, %v758_v32, %v253_v37 }
 0x357   :  { %v262_v39 = vsel %vm259_vm15, %v261_v21, %v257_v38 }
 0x358   :  { %v265_v40 = vrot.slane %v262_v39, 4 }
 0x35a   :  { %267 = vrot.lane.b32.xlu2 %v265_v40, %s823_s3  ;;  %271 = vrot.lane.b32.xlu1 %v265_v40, %s824_s23 }
 0x362   :  { %269 = vrot.lane.b32.xlu1 %v265_v40, %s825_s24 }
 0x3b4   :  { %v268_v45 = vpop.permute.xlu2 %267 }
 0x3b5   :  { %v275_v47 = vmul.f32 %v268_v45, %v218_v16 }
 0x3cc   :  { %v272_v41 = vpop.permute.xlu1 %271 }
 0x3cd   :  { %v273_v42 = vmul.f32 2.0, %v272_v41 }
 0x3cf   :  { %v721_v43 = vadd.f32 -1.0, %v273_v42 }
 0x3d1   :  { %v277_v44 = vrot.slane %v721_v43, 4 }
 0x3d3   :  { %v279_v46 = vmul.f32 %v277_v44, %v262_v39 }
 0x3d4   :  { %v270_v51 = vpop.permute.xlu1 %269 }
 0x3d5   :  { %v281_v48 = vrot.slane %v279_v46, 4 }
 0x3d7   :  { %v283_v49 = vadd.f32 %v281_v48, %v275_v47 }
 0x3d9   :  { %759 = vtanh.f32 %v283_v49 }
 0x3df   :  { %v760_v50 = vpop.eup %759 }
 0x3e0   :  { %v285_v52 = vmul.f32 %v760_v50, %v270_v51 }
 0x3e2   :  { %302 = vmatmul.f32.vlgmr.msrb.gmra.mxu0 %v285_v52 }
 0x45f   :  { %v303_v54 = vpop.f32.mrf.mxu0 }
 0x460   :  { %v307_v55 = vrot.slane %v303_v54, 2 }
 0x462   :  { %v309_v56 = vadd.f32 %v307_v55, %v1104_v29 }
 0x464   :  { %v722_v57 = vmul.f32 -1.442695, %v309_v56 }
 0x466   :  { %761 = vpow2.f32 %v722_v57 }
 0x46c   :  { %v762_v58 = vpop.eup %761 }
 0x46d   :  { %v313_v59 = vadd.f32 1.0, %v762_v58 }
 0x46f   :  { %763 = vrcp.f32 %v313_v59  ;;  %v325_v63 = vand.u32 2147483648, %v313_v59  ;;  %v323_v1 = vand.u32 2147483647, %v313_v59  ;;  %vm319_vm1 = vweird.f32 %v313_v59 }
 0x471   :  { %v326_v3 = vor.u32 1.1754944e-38, %v325_v63  ;;  %vm324_vm3 = vcmp.eq.f32.partialorder %v323_v1, 8.507059e+37 }
 0x475   :  { %v764_v60 = vpop.eup %763 }
 0x476   :  { %v315_v61 = vmul.f32 %v764_v60, %v313_v59  ;;  %vm320_vm0 = vweird.f32 %v764_v60 }
 0x477   :  { %vm321_vm2 = vmor %vm319_vm1, %vm320_vm0 }
 0x478   :  { %v316_v62 = vsub.f32 1.0, %v315_v61 }
 0x47a   :  { %v317_v0 = vmul.f32 %v764_v60, %v316_v62 }
 0x47c   :  { %v318_v2 = vadd.f32 %v764_v60, %v317_v0 }
 0x47e   :  { %v322_v4 = vsel %vm321_vm2, %v764_v60, %v318_v2 }
 0x47f   :  { %v327_v5 = vsel %vm324_vm3, %v326_v3, %v322_v4 }
 0x480   :  { %v330_v29 = vrot.slane %v327_v5, 6 }
 0x482   :  { %334 = vrot.lane.b32.xlu1 %v330_v29, %s825_s24  ;;  %332 = vrot.lane.b32.xlu0 %v330_v29, %s823_s3 }
 0x483   :  { %336 = vrot.lane.b32.xlu2 %v330_v29, %s824_s23 }
 0x4dd   :  { %v337_v6 = vpop.permute.xlu2 %336 }
 0x4de   :  { %v338_v7 = vmul.f32 2.0, %v337_v6 }
 0x4e0   :  { %v723_v8 = vadd.f32 -1.0, %v338_v7 }
 0x4e2   :  { %v342_v9 = vrot.slane %v723_v8, 2 }
 0x4e4   :  { %v344_v10 = vmul.f32 %v342_v9, %v327_v5 }
 0x4e6   :  { %v346_v12 = vrot.slane %v344_v10, 6 }
 0x4f4   :  { %v333_v11 = vpop.permute.xlu0 %332  ;;  %v335_v16 = vpop.permute.xlu1 %334 }
 0x4f5   :  { %v340_v13 = vmul.f32 %v333_v11, %v283_v49 }
 0x4f7   :  { %v348_v14 = vadd.f32 %v346_v12, %v340_v13 }
 0x4f9   :  { %765 = vtanh.f32 %v348_v14 }
 0x4ff   :  { %v766_v15 = vpop.eup %765 }
 0x500   :  { %v350_v17 = vmul.f32 %v766_v15, %v335_v16 }
 0x502   :  { %367 = vmatmul.f32.vlgmr.msrb.gmra.mxu1 %v350_v17 }
 0x57f   :  { %v368_v19 = vpop.f32.mrf.mxu1 }
 0x580   :  { %v371_v20 = vadd.f32 %v368_v19, %v1129_v18 }
 0x582   :  { %v724_v22 = vmul.f32 -1.442695, %v371_v20 }
 0x584   :  { %767 = vpow2.f32 %v724_v22 }
 0x58a   :  { %v768_v24 = vpop.eup %767 }
 0x58b   :  { %v375_v25 = vadd.f32 1.0, %v768_v24 }
 0x58d   :  { %769 = vrcp.f32 %v375_v25  ;;  %v387_v31 = vand.u32 2147483648, %v375_v25  ;;  %v385_v33 = vand.u32 2147483647, %v375_v25  ;;  %vm381_vm5 = vweird.f32 %v375_v25 }
 0x58f   :  { %v388_v26 = vor.u32 1.1754944e-38, %v387_v31  ;;  %vm386_vm7 = vcmp.eq.f32.partialorder %v385_v33, 8.507059e+37 }
 0x593   :  { %v770_v27 = vpop.eup %769 }
 0x594   :  { %v377_v28 = vmul.f32 %v770_v27, %v375_v25  ;;  %vm382_vm4 = vweird.f32 %v770_v27 }
 0x595   :  { %vm383_vm6 = vmor %vm381_vm5, %vm382_vm4  ;;  %vm648_vm4 = vcmask 261120   ;;  %vm672_vm5 = vcmask 33792  }
 0x596   :  { %v378_v30 = vsub.f32 1.0, %v377_v28 }
 0x598   :  { %v379_v32 = vmul.f32 %v770_v27, %v378_v30 }
 0x59a   :  { %v380_v34 = vadd.f32 %v770_v27, %v379_v32 }
 0x59c   :  { %v384_v35 = vsel %vm383_vm6, %v770_v27, %v380_v34  ;;  %vm680_vm6 = vcmask 39936  }
 0x59d   :  { %v389_v36 = vsel %vm386_vm7, %v388_v26, %v384_v35  ;;  %vm693_vm7 = vcmask 32768  }
 0x59e   :  { %393 = vrot.lane.b32.xlu1 %v389_v36, %s825_s24  ;;  %391 = vrot.lane.b32.xlu0 %v389_v36, %s823_s3 }
 0x59f   :  { %395 = vrot.lane.b32.xlu2 %v389_v36, %s824_s23 }
 0x5f9   :  { %v396_v23 = vpop.permute.xlu2 %395 }
 0x5fa   :  { %v397_v37 = vmul.f32 2.0, %v396_v23 }
 0x5fc   :  { %v725_v21 = vadd.f32 -1.0, %v397_v37 }
 0x5fe   :  { %v400_v39 = vmul.f32 %v725_v21, %v389_v36 }
 0x610   :  { %v392_v38 = vpop.permute.xlu0 %391  ;;  %v394_v43 = vpop.permute.xlu1 %393 }
 0x611   :  { %v399_v40 = vmul.f32 %v392_v38, %v348_v14 }
 0x613   :  { %v401_v41 = vadd.f32 %v400_v39, %v399_v40 }
 0x615   :  { %771 = vtanh.f32 %v401_v41 }
 0x61b   :  { %v772_v42 = vpop.eup %771 }
 0x61c   :  { %v403_v44 = vmul.f32 %v772_v42, %v394_v43 }
 0x61e   :  { %420 = vmatmul.f32.vlgmr.msrb.gmra.mxu2 %v403_v44 }
 0x6a1   :  { %v421_v45 = vpop.f32.mrf.mxu2 }
 0x6a2   :  { %v425_v46 = vrot.slane %v421_v45, 6 }
 0x6a4   :  { %v427_v47 = vadd.f32 %v425_v46, %v1129_v18 }
 0x6a6   :  { %v726_v48 = vmul.f32 -1.442695, %v427_v47 }
 0x6a8   :  { %773 = vpow2.f32 %v726_v48 }
 0x6ae   :  { %v774_v49 = vpop.eup %773 }
 0x6af   :  { %v431_v50 = vadd.f32 1.0, %v774_v49 }
 0x6b1   :  { %775 = vrcp.f32 %v431_v50  ;;  %v443_v54 = vand.u32 2147483648, %v431_v50  ;;  %v441_v56 = vand.u32 2147483647, %v431_v50  ;;  %vm437_vm9 = vweird.f32 %v431_v50 }
 0x6b3   :  { %v444_v58 = vor.u32 1.1754944e-38, %v443_v54  ;;  %vm442_vm11 = vcmp.eq.f32.partialorder %v441_v56, 8.507059e+37  ;;  %v614_v56 = vld [vmem:[%s1224_s4 + $0x78] sm:$0xff] }
 0x6b4   :  { %619 = vmatpush.msra.mxu1 %v614_v56 }
 0x6b7   :  { %v776_v51 = vpop.eup %775 }
 0x6b8   :  { %v433_v52 = vmul.f32 %v776_v51, %v431_v50  ;;  %vm438_vm8 = vweird.f32 %v776_v51 }
 0x6b9   :  { %vm439_vm10 = vmor %vm437_vm9, %vm438_vm8 }
 0x6ba   :  { %v434_v53 = vsub.f32 1.0, %v433_v52 }
 0x6bc   :  { %v435_v55 = vmul.f32 %v776_v51, %v434_v53 }
 0x6be   :  { %v436_v57 = vadd.f32 %v776_v51, %v435_v55 }
 0x6c0   :  { %v440_v59 = vsel %vm439_vm10, %v776_v51, %v436_v57  ;;  %v613_v57 = vld [vmem:[%s1224_s4 + $0x70] sm:$0xff] }
 0x6c1   :  { %v445_v60 = vsel %vm442_vm11, %v444_v58, %v440_v59  ;;  %620 = vmatpush.msra.mxu1 %v613_v57  ;;  %v612_v58 = vld [vmem:[%s1224_s4 + $0x68] sm:$0xff]  ;;  %v611_v59 = vld [vmem:[%s1224_s4 + $0x60] sm:$0xff] }
 0x6c2   :  { %v448_v61 = vrot.slane %v445_v60, 2 }
 0x6c3   :  { %621 = vmatpush.msra.mxu1 %v612_v58 }
 0x6c4   :  { %452 = vrot.lane.b32.xlu1 %v448_v61, %s825_s24  ;;  %450 = vrot.lane.b32.xlu0 %v448_v61, %s823_s3 }
 0x6c5   :  { %454 = vrot.lane.b32.xlu2 %v448_v61, %s824_s23  ;;  %622 = vmatpush.msra.mxu1 %v611_v59  ;;  %v609_v61 = vld [vmem:[%s1224_s4 + $0x50] sm:$0xff] }
 0x71f   :  { %v455_v62 = vpop.permute.xlu2 %454 }
 0x720   :  { %v456_v63 = vmul.f32 2.0, %v455_v62  ;;  %v608_v62 = vld [vmem:[%s1224_s4 + $0x48] sm:$0xff] }
 0x722   :  { %v727_v0 = vadd.f32 -1.0, %v456_v63  ;;  %v607_v63 = vld [vmem:[%s1224_s4 + $0x40] sm:$0xff] }
 0x724   :  { %v460_v1 = vrot.slane %v727_v0, 6  ;;  %v606_v0 = vld [vmem:[%s1224_s4 + $0x38] sm:$0xff] }
 0x726   :  { %v462_v2 = vmul.f32 %v460_v1, %v445_v60  ;;  %v610_v60 = vld [vmem:[%s1224_s4 + $0x58] sm:$0xff]  ;;  %v605_v1 = vld [vmem:[%s1224_s4 + $0x30] sm:$0xff] }
 0x727   :  { %623 = vmatpush.msra.mxu1 %v610_v60 }
 0x728   :  { %v464_v4 = vrot.slane %v462_v2, 2  ;;  %v604_v2 = vld [vmem:[%s1224_s4 + $0x28] sm:$0xff] }
 0x729   :  { %624 = vmatpush.msra.mxu1 %v609_v61 }
 0x72b   :  { %625 = vmatpush.msra.mxu1 %v608_v62 }
 0x72d   :  { %626 = vmatpush.msra.mxu1 %v607_v63 }
 0x72f   :  { %627 = vmatpush.msra.mxu1 %v606_v0 }
 0x731   :  { %628 = vmatpush.msra.mxu1 %v605_v1 }
 0x733   :  { %629 = vmatpush.msra.mxu1 %v604_v2 }
 0x736   :  { %v451_v3 = vpop.permute.xlu0 %450  ;;  %v453_v7 = vpop.permute.xlu1 %452 }
 0x737   :  { %v458_v5 = vmul.f32 %v451_v3, %v401_v41  ;;  %v603_v3 = vld [vmem:[%s1224_s4 + $0x20] sm:$0xff] }
 0x738   :  { %630 = vmatpush.msra.mxu1 %v603_v3 }
 0x739   :  { %v466_v29 = vadd.f32 %v464_v4, %v458_v5  ;;  %v602_v4 = vld [vmem:[%s1224_s4 + $0x18] sm:$0xff]  ;;  %v601_v5 = vld [vmem:[%s1224_s4 + $0x10] sm:$0xff] }
 0x73a   :  { %631 = vmatpush.msra.mxu1 %v602_v4 }
 0x73b   :  { %777 = vtanh.f32 %v466_v29 }
 0x73c   :  { %632 = vmatpush.msra.mxu1 %v601_v5 }
 0x741   :  { %v778_v6 = vpop.eup %777 }
 0x742   :  { %v468_v8 = vmul.f32 %v778_v6, %v453_v7  ;;  %v599_v6 = vld [vmem:[%s1224_s4] sm:$0xff] }
 0x744   :  { %485 = vmatmul.f32.vlgmr.msrb.gmra.mxu3 %v468_v8  ;;  %v643_v8 = vld [vmem:[%s1226_s6 + $0x18] sm:$0xff] }
 0x745   :  { %664 = vmatpush.msra.mxu2 %v643_v8 }
 0x7c7   :  { %v486_v9 = vpop.f32.mrf.mxu3 }
 0x7c8   :  { %v490_v10 = vrot.slane %v486_v9, 4  ;;  %v642_v9 = vld [vmem:[%s1226_s6 + $0x10] sm:$0xff] }
 0x7c9   :  { %665 = vmatpush.msra.mxu2 %v642_v9 }
 0x7ca   :  { %v492_v11 = vadd.f32 %v490_v10, %v1129_v18 }
 0x7cc   :  { %v728_v12 = vmul.f32 -1.442695, %v492_v11 }
 0x7ce   :  { %779 = vpow2.f32 %v728_v12 }
 0x7d4   :  { %v780_v13 = vpop.eup %779 }
 0x7d5   :  { %v496_v14 = vadd.f32 1.0, %v780_v13 }
 0x7d7   :  { %781 = vrcp.f32 %v496_v14  ;;  %v508_v19 = vand.u32 2147483648, %v496_v14  ;;  %v506_v22 = vand.u32 2147483647, %v496_v14  ;;  %vm502_vm13 = vweird.f32 %v496_v14 }
 0x7d9   :  { %v509_v25 = vor.u32 1.1754944e-38, %v508_v19  ;;  %vm507_vm15 = vcmp.eq.f32.partialorder %v506_v22, 8.507059e+37 }
 0x7dd   :  { %v782_v15 = vpop.eup %781 }
 0x7de   :  { %v498_v16 = vmul.f32 %v782_v15, %v496_v14  ;;  %vm503_vm12 = vweird.f32 %v782_v15 }
 0x7df   :  { %vm504_vm14 = vmor %vm502_vm13, %vm503_vm12 }
 0x7e0   :  { %v499_v17 = vsub.f32 1.0, %v498_v16 }
 0x7e2   :  { %v500_v20 = vmul.f32 %v782_v15, %v499_v17 }
 0x7e4   :  { %v501_v24 = vadd.f32 %v782_v15, %v500_v20 }
 0x7e6   :  { %v505_v27 = vsel %vm504_vm14, %v782_v15, %v501_v24  ;;  %v641_v24 = vld [vmem:[%s1226_s6 + $0x8] sm:$0xff] }
 0x7e7   :  { %v510_v28 = vsel %vm507_vm15, %v509_v25, %v505_v27  ;;  %666 = vmatpush.msra.mxu2 %v641_v24  ;;  %v640_v25 = vld [vmem:[%s1226_s6] sm:$0xff] }
 0x7e8   :  { %v513_v30 = vrot.slane %v510_v28, 4  ;;  %v741_v27 = vld [vmem:[%s1225_s5] ss:$0 sm:$0xff]  ;;  %s826_s5 = smov [#allocation2]  }
 0x7e9   :  { %667 = vmatpush.msra.mxu2 %v640_v25  ;;  %s700_s6 = sshll.u32 %s826_s5, 4  ;;  %s701_s6 = int_to_ptr.vmem [resolvable:$true] %s700_s6 }
 0x7ea   :  { %517 = vrot.lane.b32.xlu1 %v513_v30, %s825_s24  ;;  %515 = vrot.lane.b32.xlu0 %v513_v30, %s823_s3 }
 0x7eb   :  { %519 = vrot.lane.b32.xlu2 %v513_v30, %s824_s23 }
 0x845   :  { %v520_v31 = vpop.permute.xlu2 %519 }
 0x846   :  { %v521_v32 = vmul.f32 2.0, %v520_v31 }
 0x848   :  { %v729_v33 = vadd.f32 -1.0, %v521_v32  ;;  %v742_v32 = vld [vmem:[%s1227_s7] ss:$0 sm:$0xff] }
 0x84a   :  { %v525_v34 = vrot.slane %v729_v33, 4 }
 0x84c   :  { %v527_v26 = vmul.f32 %v525_v34, %v510_v28 }
 0x84e   :  { %v529_v36 = vrot.slane %v527_v26, 4 }
 0x85c   :  { %v516_v35 = vpop.permute.xlu0 %515  ;;  %v518_v38 = vpop.permute.xlu1 %517 }
 0x85d   :  { %v523_v23 = vmul.f32 %v516_v35, %v466_v29  ;;  %v600_v29 = vld [vmem:[%s1224_s4 + $0x8] sm:$0xff] }
 0x85e   :  { %633 = vmatpush.msra.mxu1 %v600_v29 }
 0x85f   :  { %v1143_v37 = vadd.f32 %v529_v36, %v523_v23 }
 0x860   :  { %634 = vmatpush.msra.mxu1 %v599_v6 }
 0x861   :  { %783 = vtanh.f32 %v1143_v37 }
 0x867   :  { %v784_v21 = vpop.eup %783 }
 0x868   :  { %v533_v39 = vmul.f32 %v784_v21, %v518_v38 }
 0x86a   :  { %550 = vmatmul.f32.vlgmr.msra.gmra.mxu0 %v533_v39 }
 0x8e7   :  { %v551_v40 = vpop.f32.mrf.mxu0 }
 0x8e8   :  { %v555_v41 = vrot.slane %v551_v40, 2 }
 0x8ea   :  { %v557_v42 = vadd.f32 %v555_v41, %v1129_v18 }
 0x8ec   :  { %v730_v43 = vmul.f32 -1.442695, %v557_v42 }
 0x8ee   :  { %785 = vpow2.f32 %v730_v43 }
 0x8f4   :  { %v786_v44 = vpop.eup %785 }
 0x8f5   :  { %v561_v45 = vadd.f32 1.0, %v786_v44 }
 0x8f7   :  { %787 = vrcp.f32 %v561_v45  ;;  %v573_v49 = vand.u32 2147483648, %v561_v45  ;;  %v571_v51 = vand.u32 2147483647, %v561_v45  ;;  %vm567_vm1 = vweird.f32 %v561_v45 }
 0x8f9   :  { %v574_v53 = vor.u32 1.1754944e-38, %v573_v49  ;;  %vm572_vm3 = vcmp.eq.f32.partialorder %v571_v51, 8.507059e+37 }
 0x8fd   :  { %v788_v46 = vpop.eup %787 }
 0x8fe   :  { %v563_v47 = vmul.f32 %v788_v46, %v561_v45  ;;  %vm568_vm0 = vweird.f32 %v788_v46 }
 0x8ff   :  { %vm569_vm2 = vmor %vm567_vm1, %vm568_vm0 }
 0x900   :  { %v564_v48 = vsub.f32 1.0, %v563_v47 }
 0x902   :  { %v565_v50 = vmul.f32 %v788_v46, %v564_v48 }
 0x904   :  { %v566_v52 = vadd.f32 %v788_v46, %v565_v50 }
 0x906   :  { %v570_v54 = vsel %vm569_vm2, %v788_v46, %v566_v52 }
 0x907   :  { %v575_v55 = vsel %vm572_vm3, %v574_v53, %v570_v54 }
 0x908   :  { %v578_v18 = vrot.slane %v575_v55, 6 }
 0x90a   :  { %582 = vrot.lane.b32.xlu1 %v578_v18, %s825_s24  ;;  %580 = vrot.lane.b32.xlu0 %v578_v18, %s823_s3 }
 0x90b   :  { %584 = vrot.lane.b32.xlu2 %v578_v18, %s824_s23 }
 0x965   :  { %v585_v7 = vpop.permute.xlu2 %584 }
 0x966   :  { %v586_v10 = vmul.f32 2.0, %v585_v7 }
 0x968   :  { %v731_v11 = vadd.f32 -1.0, %v586_v10 }
 0x96a   :  { %v590_v12 = vrot.slane %v731_v11, 2 }
 0x96c   :  { %v592_v13 = vmul.f32 %v590_v12, %v575_v55 }
 0x96e   :  { %v594_v15 = vrot.slane %v592_v13, 6 }
 0x97c   :  { %v581_v14 = vpop.permute.xlu0 %580  ;;  %v583_v20 = vpop.permute.xlu1 %582 }
 0x97d   :  { %v588_v16 = vmul.f32 %v581_v14, %v1143_v37 }
 0x97f   :  { %v596_v17 = vadd.f32 %v594_v15, %v588_v16 }
 0x981   :  { %789 = vtanh.f32 %v596_v17 }
 0x987   :  { %v790_v19 = vpop.eup %789 }
 0x988   :  { %v598_v22 = vmul.f32 %v790_v19, %v583_v20 }
 0x98a   :  { %635 = vmatmul.f32.vlgmr.msra.gmra.mxu1 %v598_v22 }
 0xa07   :  { %v636_v28 = vpop.f32.mrf.mxu1 }
 0xa08   :  { %v637_v30 = vadd.f32 %v741_v27, %v636_v28 }
 0xa0a   :  { %v639_v31 = vmax.f32 %v637_v30, 0.0 }
 0xa0c   :  { %732 = vmatmul.msk.f32.vlgmr.msra.gmra.mxu2 %vm648_vm4, %v639_v31 }
 0xa8f   :  { %v669_v33 = vpop.f32.mrf.mxu2 }
 0xa90   :  { %v670_v34 = vadd.f32 %v742_v32, %v669_v33 }
 0xa92   :  { %v673_v26 = vsel %vm672_vm5, %v670_v34, 0.0 }
 0xa93   :  { %v674_v35 = vrot.slane %v673_v26, 4 }
 0xa95   :  { %v675_v36 = vadd.f32 %v674_v35, %v673_v26 }
 0xa97   :  { %v676_v23 = vrot.slane %v675_v36, 2 }
 0xa99   :  { %v677_v37 = vadd.f32 %v676_v23, %v675_v36 }
 0xa9b   :  { %v678_v21 = vrot.slane %v677_v37, 1 }
 0xa9d   :  { %v679_v38 = vadd.f32 %v678_v21, %v677_v37 }
 0xa9f   :  { %v681_v39 = vsel %vm680_vm6, %v679_v38, -inf }
 0xaa0   :  { %682 = vmax.xlane.f32.xlu2 %v681_v39 }
 0xb13   :  { %v683_v40 = vpop.xlane.xlu2 %682 }
 0xb14   :  { %v684_v41 = vsub.f32 %v679_v38, %v683_v40 }
 0xb16   :  { %v685_v42 = vmul.f32 1.442695, %v684_v41 }
 0xb18   :  { %791 = vpow2.f32 %v685_v42 }
 0xb1e   :  { %v792_v43 = vpop.eup %791 }
 0xb1f   :  { %v687_v44 = vsel %vm680_vm6, %v792_v43, 0.0 }
 0xb20   :  { %688 = vadd.xlane.f32.xlu0 %v687_v44 }
 0xb93   :  { %v689_v45 = vpop.xlane.xlu0 %688 }
 0xb94   :  { %793 = vlog2.f32 %v689_v45 }
 0xb9a   :  { %v794_v46 = vpop.eup %793 }
 0xb9b   :  { %v691_v47 = vmul.f32 0.6931472, %v794_v46 }
 0xb9d   :  { %v692_v48 = vsub.f32 %v684_v41, %v691_v47 }
 0xb9f   :  { %694 = vst.msk [vmem:[#allocation2] sm:$0x1] %vm693_vm7, %v692_v48 }
 0xba0   :  { %705 = dma.vmem_to_hbm [thread:$0]  %s701_s6, 16, %s703_s22, [#allocation3]  }
 0xba1   :  { %819 = dma.done.wait [#allocation3], 16  }
 0xba2   :  { %820 = vsyncadd [#allocation3], 4294967280 }
 0xba3   :  { %710 = vsyncpa [#allocation3], 1 }

</bundles_post_ra>
